<compile_context>
chip_gen: v7x
topology: tpu7x:2x2x1
jax: 0.10.0
libtpu: 0.0.40
codegen_flags: <defaults>
</compile_context>

<pallas_src>
import math

import jax
import jax.numpy as jnp
from jax.experimental import pallas as pl
from jax.experimental.pallas import tpu as pltpu

_LANE = 128
_MIB = 1024 * 1024


# ------------------------------ small helpers --------------------------------


def _round_up(x, m):
    return ((x + m - 1) // m) * m


def _sublane(dtype):
    """Sublane tile of the second-to-last dim: 8 (f32) / 16 (bf16) / 32 (i8)."""
    return max(8, 32 // jnp.dtype(dtype).itemsize)


def _padded2d_bytes(rows, cols, dtype):
    d = jnp.dtype(dtype)
    return _round_up(rows, _sublane(d)) * _round_up(cols, _LANE) * d.itemsize


def _vmem_capacity_bytes():
    try:
        return int(pltpu.get_tpu_info().vmem_capacity_bytes)
    except Exception:
        return 64 * _MIB  # assume the smallest generation (v7x: 64 MiB / TC)


def _choose_tb(b, per_row_bytes, budget_bytes, target_rows, align):
    """Candidate rows (of B) processed per grid step."""
    rows = max(1, min(budget_bytes // max(1, per_row_bytes), max(1, target_rows)))
    if rows >= b:
        return b  # single block: full array dim is always legal
    tb = max(align, (rows // align) * align)  # keep sublane tiling clean
    return min(tb, b)


# ------------------------------ kernel bodies ---------------------------------


def _make_packed_kernel(n_cand, hidden, tb, user_resident):
    """Lane-dense kernel: cand (TB, N*H), user (TB|B, H) -> out (TB, N)."""
    nh = n_cand * hidden

    def kernel(cand_ref, user_ref, out_ref):
        if user_resident:
            row0 = pl.multiple_of(pl.program_id(0) * tb, tb)
            u = user_ref[pl.ds(row0, tb), :]
        else:
            u = user_ref[...]
        u = u.astype(jnp.float32)
        c = cand_ref[...].astype(jnp.float32)  # f32 accumulate (v5e has no bf16 VPU)
        # Replicate the user vector across the N candidate segments along the
        # lane axis (VMEM only -- never materialized in HBM).
        u_rep = jnp.tile(u, (1, n_cand))
        prod = c * u_rep
        # Segmented sum over each H-wide lane segment via a tiny MXU matmul
        # against a 0/1 segment matrix: keeps the hot path lane-dense and
        # avoids an in-kernel minor-dim reshape.  MXU is otherwise idle here.
        rows = jax.lax.broadcasted_iota(jnp.int32, (nh, n_cand), 0)
        cols = jax.lax.broadcasted_iota(jnp.int32, (nh, n_cand), 1)
        lo = cols * hidden
        seg = ((rows >= lo) & (rows < lo + hidden)).astype(jnp.float32)
        out = jnp.dot(prod, seg, preferred_element_type=jnp.float32,
                      precision=jax.lax.Precision.HIGHEST)
        out_ref[...] = out.astype(out_ref.dtype)

    return kernel


def _make_dense_kernel(tb, user_resident):
    """General kernel: cand (TB, TN, H), user (TB|B, H) -> out (TB, TN)."""

    def kernel(cand_ref, user_ref, out_ref):
        if user_resident:
            row0 = pl.multiple_of(pl.program_id(0) * tb, tb)
            u = user_ref[pl.ds(row0, tb), :]
        else:
            u = user_ref[...]
        u = u.astype(jnp.float32)
        c = cand_ref[...].astype(jnp.float32)
        out_ref[...] = jnp.sum(c * u[:, None, :], axis=-1).astype(out_ref.dtype)

    return kernel


# ------------------------------ pallas dispatch --------------------------------


def _dot_click_pallas(cand3, user2, out_dtype):
    """cand3: (B, N, H), user2: (B, H) -> (B, N)."""
    B, N, H = cand3.shape
    cand_dt, user_dt = cand3.dtype, user2.dtype
    c_isz = jnp.dtype(cand_dt).itemsize
    u_isz = jnp.dtype(user_dt).itemsize
    o_isz = jnp.dtype(out_dtype).itemsize

    # Per-generation VMEM budget (padded shapes, x2 double-buffering, and the
    # f32 compute intermediates all counted).
    vmem_cap = _vmem_capacity_bytes()                     # 64 MiB v7x / 128 MiB v5e,v6e
    vmem_limit = int(max(32 * _MIB, min(vmem_cap - 8 * _MIB, 120 * _MIB)))
    budget = max(16 * _MIB, vmem_cap - 20 * _MIB)         # pipeline buffers + scratch
    cand_target = 16 * _MIB                               # aim for 8-16 MiB candidate blocks

    align = max(_sublane(cand_dt), _sublane(user_dt), _sublane(out_dtype))
    h_pad = _round_up(H, _LANE)
    nh = N * H

    packed = (H < _LANE) and (N > 1) and (nh <= 2048)

    if packed:
        nh_pad = _round_up(nh, _LANE)
        cand_row = nh_pad * c_isz
        user_row = h_pad * u_isz
        out_row = _round_up(N, _LANE) * o_isz
        interm_row = 3 * nh_pad * 4        # f32 cast + replicated user + product
        per_row = 2 * (cand_row + user_row + out_row) + interm_row
        tb = _choose_tb(B, per_row, budget, cand_target // max(1, cand_row), align)
        num_tiles = pl.cdiv(B, tb)

        user_resident = (B % tb == 0) and (_padded2d_bytes(B, H, user_dt) <= 4 * _MIB)
        if user_resident:
            user_spec = pl.BlockSpec((B, H), lambda i: (0, 0))
        else:
            user_spec = pl.BlockSpec((tb, H), lambda i: (i, 0))

        cand2 = cand3.reshape(B, nh)       # lane-dense candidate slab
        return pl.pallas_call(
            _make_packed_kernel(N, H, tb, user_resident),
            out_shape=jax.ShapeDtypeStruct((B, N), out_dtype),
            grid=(num_tiles,),
            in_specs=[pl.BlockSpec((tb, nh), lambda i: (i, 0)), user_spec],
            out_specs=pl.BlockSpec((tb, N), lambda i: (i, 0)),
            compiler_params=pltpu.CompilerParams(
                dimension_semantics=("parallel",),
                vmem_limit_bytes=vmem_limit,
            ),
        )(cand2, user2)

    # General path: (TB, TN, H) blocks on a 2-D fully parallel grid.
    sub_c = _sublane(cand_dt)

    def _per_row(tn):
        cand_row = _round_up(tn, sub_c) * h_pad * c_isz
        user_row = h_pad * u_isz
        out_row = _round_up(tn, _LANE) * o_isz
        interm_row = 3 * _round_up(tn, sub_c) * h_pad * 4
        return 2 * (cand_row + user_row + out_row) + interm_row

    tn = N
    while tn > _LANE and align * _per_row(tn) > budget:
        tn = max(_LANE, _round_up(tn // 2, _LANE))   # TN stays a multiple of 128

    cand_row = _round_up(tn, sub_c) * h_pad * c_isz
    tb = _choose_tb(B, _per_row(tn), budget, cand_target // max(1, cand_row), align)
    grid = (pl.cdiv(B, tb), pl.cdiv(N, tn))

    user_resident = (B % tb == 0) and (_padded2d_bytes(B, H, user_dt) <= 4 * _MIB)
    if user_resident:
        user_spec = pl.BlockSpec((B, H), lambda i, j: (0, 0))
    else:
        user_spec = pl.BlockSpec((tb, H), lambda i, j: (i, 0))

    return pl.pallas_call(
        _make_dense_kernel(tb, user_resident),
        out_shape=jax.ShapeDtypeStruct((B, N), out_dtype),
        grid=grid,
        in_specs=[pl.BlockSpec((tb, tn, H), lambda i, j: (i, j, 0)), user_spec],
        out_specs=pl.BlockSpec((tb, tn), lambda i, j: (i, j)),
        compiler_params=pltpu.CompilerParams(
            dimension_semantics=("parallel", "parallel"),
            vmem_limit_bytes=vmem_limit,
        ),
    )(cand3, user2)


# ------------------------------ public wrapper --------------------------------


def dot_product_click_predictor(candidates_vector, user_vector):
    """probability = (candidates_vector * user_vector).sum(-1) with torch broadcasting."""
    cand = jnp.asarray(candidates_vector)
    user = jnp.asarray(user_vector)
    out_dtype = jnp.result_type(cand.dtype, user.dtype)

    bshape = jnp.broadcast_shapes(cand.shape, user.shape)
    lead = tuple(bshape[:-1])
    hidden = bshape[-1]
    total_rows = math.prod(lead)

    if total_rows == 0 or hidden == 0:
        return jnp.zeros(lead, dtype=out_dtype)

    # Candidates normally already carry the full broadcast shape; only
    # materialize a broadcast if the caller passed a smaller array.
    if cand.shape != bshape:
        cand = jnp.broadcast_to(cand, bshape)

    # Align the user vector's rank with the broadcast shape.
    user = user.reshape((1,) * (len(bshape) - user.ndim) + user.shape)
    k = len(lead)
    bcast_axes = [i for i in range(k) if user.shape[i] == 1 and bshape[i] > 1]
    real_axes = [i for i in range(k) if user.shape[i] == bshape[i] and bshape[i] > 1]
    fast = (not bcast_axes) or (not real_axes) or (max(real_axes) < min(bcast_axes))

    if fast:
        # Canonical (B user-distinct rows) x (N candidates sharing a user) x H,
        # e.g. cand (B, N, H) with user (B, 1, H)  ->  (B, N).
        split = min(bcast_axes) if bcast_axes else k
        B = math.prod(bshape[:split]) if split else 1
        N = math.prod(bshape[split:k]) if split < k else 1
        cand3 = cand.reshape(B, N, hidden)
        user2 = user.reshape(B, user.shape[-1])
        if user2.shape[-1] != hidden:           # user broadcast along H (tiny)
            user2 = jnp.broadcast_to(user2, (B, hidden))
    else:
        # TODO(synk): exotic interleaved broadcast pattern materializes the user
        # broadcast in HBM (never produced by this module's normal usage).
        B, N = total_rows, 1
        cand3 = cand.reshape(B, 1, hidden)
        user2 = jnp.broadcast_to(user, bshape).reshape(B, hidden)

    out = _dot_click_pallas(cand3, user2, out_dtype)
    return out.reshape(lead)


if __name__ == "__main__":
    key = jax.random.PRNGKey(0)
    k1, k2, k3, k4, k5 = jax.random.split(key, 5)

    # Small shapes consistent with the module: batch=2, candidates=8, hidden=32.
    B, N, H = 2, 8, 32
    candidates_vector = jax.random.normal(k1, (B, N, H), dtype=jnp.float32)
    user_vector = jax.random.normal(k2, (B, 1, H), dtype=jnp.float32)  # broadcast over N

    prob = jax.block_until_ready(
        dot_product_click_predictor(candidates_vector, user_vector))
    ref = jnp.sum(candidates_vector * user_vector, axis=-1)
    assert prob.shape == (B, N), prob.shape
    assert prob.dtype == ref.dtype, (prob.dtype, ref.dtype)
    assert jnp.allclose(prob, ref, atol=1e-4, rtol=1e-4), \
        float(jnp.max(jnp.abs(prob - ref)))

    # Shared user vector (H,) broadcast over batch and candidates.
    shared_user = jax.random.normal(k3, (H,), dtype=jnp.float32)
    prob2 = jax.block_until_ready(
        dot_product_click_predictor(candidates_vector, shared_user))
    ref2 = jnp.sum(candidates_vector * shared_user, axis=-1)
    assert jnp.allclose(prob2, ref2, atol=1e-4, rtol=1e-4)

    # Larger hidden size exercises the general (already lane-dense) path.
    B2, N2, H2 = 4, 4, 256
    cand_big = jax.random.normal(k4, (B2, N2, H2), dtype=jnp.float32)
    user_big = jax.random.normal(k5, (B2, 1, H2), dtype=jnp.float32)
    prob3 = jax.block_until_ready(dot_product_click_predictor(cand_big, user_big))
    ref3 = jnp.sum(cand_big * user_big, axis=-1)
    assert prob3.shape == (B2, N2), prob3.shape
    assert jnp.allclose(prob3, ref3, atol=1e-4, rtol=1e-4)

    print("KERNEL_OK")
</pallas_src>

<mosaic_0001>
module attributes {stable_mosaic.version = 11 : i64} {
  func.func @kernel(%arg0: i32, %arg1: memref<2x256xf32, #tpu.memory_space<vmem>>, %arg2: memref<2x32xf32, #tpu.memory_space<vmem>>, %arg3: memref<2x8xf32, #tpu.memory_space<vmem>>) attributes {dimension_semantics = [#tpu.dimension_semantics<parallel>], iteration_bounds = array<i64: 1>, scalar_prefetch = 0 : i64, scratch_operands = 0 : i64, tpu.core_type = #tpu.core_type<tc>, window_params = [{transform_indices = @transform_0, window_bounds = array<i64: 2, 256>}, {pipeline_mode = #tpu.pipeline_mode<synchronous>, transform_indices = @transform_1, window_bounds = array<i64: 2, 32>}, {transform_indices = @transform_2, window_bounds = array<i64: 2, 8>}]} {
    %c2_i32 = arith.constant 2 : i32
    %0 = arith.muli %arg0, %c2_i32 : i32
    %1 = tpu.assume_multiple %0, 2 : i32
    %2 = arith.index_cast %1 : i32 to index
    %c0 = arith.constant 0 : index
    %3 = vector.load %arg2[%2, %c0] : memref<2x32xf32, #tpu.memory_space<vmem>>, vector<2x32xf32>
    %c0_0 = arith.constant 0 : index
    %c0_1 = arith.constant 0 : index
    %4 = vector.load %arg1[%c0_0, %c0_1] : memref<2x256xf32, #tpu.memory_space<vmem>>, vector<2x256xf32>
    %5 = tpu.concatenate %3, %3, %3, %3, %3, %3, %3, %3 in 1 : vector<2x32xf32>, vector<2x32xf32>, vector<2x32xf32>, vector<2x32xf32>, vector<2x32xf32>, vector<2x32xf32>, vector<2x32xf32>, vector<2x32xf32> -> vector<2x256xf32>
    %6 = arith.mulf %4, %5 : vector<2x256xf32>
    %7 = tpu.iota {dimensions = array<i32: 0>} : vector<256x8xi32>
    %8 = tpu.iota {dimensions = array<i32: 1>} : vector<256x8xi32>
    %c32_i32 = arith.constant 32 : i32
    %9 = vector.broadcast %c32_i32 : i32 to vector<256x8xi32>
    %10 = arith.muli %8, %9 : vector<256x8xi32>
    %11 = arith.cmpi sge, %7, %10 : vector<256x8xi32>
    %c32_i32_2 = arith.constant 32 : i32
    %12 = vector.broadcast %c32_i32_2 : i32 to vector<256x8xi32>
    %13 = arith.addi %10, %12 : vector<256x8xi32>
    %14 = arith.cmpi slt, %7, %13 : vector<256x8xi32>
    %15 = arith.andi %11, %14 : vector<256x8xi1>
    %16 = arith.extui %15 : vector<256x8xi1> to vector<256x8xi32>
    %17 = arith.sitofp %16 : vector<256x8xi32> to vector<256x8xf32>
    %cst = arith.constant dense<0.000000e+00> : vector<2x8xf32>
    %18 = tpu.matmul %6, %17, %cst {dimension_numbers = #tpu.dot_dimension_numbers<[1], [0], [0], [1], [0, 0, 1, 1], [], []>, precision = #tpu.contract_precision<fp32>} : vector<2x256xf32>, vector<256x8xf32>, vector<2x8xf32> -> vector<2x8xf32>
    %c0_3 = arith.constant 0 : index
    %c0_4 = arith.constant 0 : index
    %19 = vector.load %arg3[%c0_3, %c0_4] : memref<2x8xf32, #tpu.memory_space<vmem>>, vector<2x8xf32>
    tpu.vector_store %arg3[%c0_3, %c0_4], %18 {strides = array<i32>} : memref<2x8xf32, #tpu.memory_space<vmem>>, vector<2x8xf32>,
    return
  }
  func.func @transform_0(%arg0: i32) -> (i32, i32) {
    %c0_i32 = arith.constant 0 : i32
    %c0_i32_0 = arith.constant 0 : i32
    return %arg0, %c0_i32 : i32, i32
  }
  func.func @transform_1(%arg0: i32) -> (i32, i32) {
    %c0_i32 = arith.constant 0 : i32
    %c0_i32_0 = arith.constant 0 : i32
    %c0_i32_1 = arith.constant 0 : i32
    return %c0_i32, %c0_i32_0 : i32, i32
  }
  func.func @transform_2(%arg0: i32) -> (i32, i32) {
    %c0_i32 = arith.constant 0 : i32
    %c0_i32_0 = arith.constant 0 : i32
    return %arg0, %c0_i32 : i32, i32
  }
}

</mosaic_0001>

<bundles_post_ra>
// kernel: tpu_custom_call.1
= control target key start
LH: loop header
LB: loop body
LE: loop exit
PB: predicated region body
PF: predicated region fallthrough
CT: control target
= control target key end

     0   :  { %7 = vsyncpa [#allocation3], 0  ;;  %s2673_s0 = inlined_call_operand.hbm [shape: f32[2,256], index: 0, kind: input, shape index: {}]   ;;  %s2674_s1 = inlined_call_operand.vmem [shape: f32[2,32], index: 1, kind: input, shape index: {}]   ;;  %s2675_s2 = inlined_call_operand.hbm [shape: f32[2,8], index: 2, kind: output, shape index: {}]  }
   0x1   :  { %8 = vsyncpa [#allocation4], 0  ;;  %s1728_s9 = smov [#allocation2]   ;;  %s1680_s13 = scalar_lea.hbm %s2673_s0, 64 }
   0x2   :  { %s15_s10 = sshll.u32 %s1728_s9, 4  ;;  %p1681_p0 = scmp.ne.s32.totalorder %s2673_s0, %s1680_s13  ;;  %s16_s10 = int_to_ptr.vmem [resolvable:$true] %s15_s10 }
   0x3   :  { %p1684_p1 = scmp.lt.u32.totalorder %s1680_s13, %s2673_s0 }
   0x5   :  { %p1686_p2 = pnand %p1684_p1, %p1681_p0 }
   0x7   :  { %1689 = shalt.err (!%p1686_p2)
}
   0x8   :  { %s1690_s18 = scalar_lea.vmem %s16_s10, 64  ;;  %p1695_p4 = scmp.lt.s32.totalorder %s16_s10, %s16_s10 }
   0x9   :  { %p1691_p3 = scmp.ne.s32.totalorder %s16_s10, %s1690_s18  ;;  %p1696_p5 = scmp.lt.s32.totalorder %s1690_s18, %s1690_s18 }
   0xb   :  { %p1697_p6 = por %p1696_p5, %p1695_p4 }
   0xd   :  { %p1698_p7 = pnand %p1697_p6, %p1691_p3 }
   0xf   :  { %1701 = shalt.err (!%p1698_p7)
}
  0x10   :  { %18 = dma.hbm_to_vmem [thread:$0]  %s2673_s0, 64, %s16_s10, [#allocation3]  }
  0x11   :  { %1724 = dma.done.wait [#allocation3], 64  }
  0x12   :  { %1725 = vsyncadd [#allocation3], 4294967232  ;;  %v49_v0 = vlaneseq  ;;  %v1784_v12 = vld [vmem:[%s2674_s1] sm:$0x3]  ;;  %s1729_s22 = smov 32   ;;  %s1730_s23 = smov 96  }
  0x13   :  { %29 = vrot.lane.b32.xlu0 %v1784_v12, %s1729_s22  ;;  %35 = vrot.lane.b32.xlu1 %v1784_v12, %s1730_s23  ;;  %v1731_v16 = vmov 0.0   ;;  %s1732_s1 = smov 64   ;;  %v2714_v54 = vmov 1.0|1.0   ;;  %s1735_s24 = smov [#allocation5]  }
  0x14   :  { %v1763_v1 = vshrl.u32 %v49_v0, 7  ;;  %v89_v2 = vand.u32 127, %v49_v0  ;;  %s1133_s25 = sshll.u32 %s1735_s24, 4  ;;  %s1134_s25 = int_to_ptr.vmem [resolvable:$true] %s1133_s25 }
  0x15   :  { %s1702_s26 = scalar_lea.vmem %s1134_s25, 32  ;;  %p1707_p9 = scmp.lt.s32.totalorder %s1134_s25, %s1134_s25 }
  0x16   :  { %v72_v3 = vadd.s32 128, %v1763_v1  ;;  %v73_v4 = vadd.s32 136, %v1763_v1  ;;  %v1767_v5 = vmul.u32 32, %v89_v2  ;;  %v57_v6 = vadd.s32 8, %v1763_v1  ;;  %p1703_p8 = scmp.ne.s32.totalorder %s1134_s25, %s1702_s26  ;;  %p1708_p10 = scmp.lt.s32.totalorder %s1702_s26, %s1702_s26 }
  0x17   :  { %v74_v7 = vadd.s32 144, %v1763_v1  ;;  %v75_v8 = vadd.s32 152, %v1763_v1  ;;  %v58_v9 = vadd.s32 16, %v1763_v1  ;;  %v59_v10 = vadd.s32 24, %v1763_v1  ;;  %32 = vrot.lane.b32.xlu0 %v1784_v12, %s1732_s1 }
  0x18   :  { %vm107_vm0 = vcmp.ge.s32.totalorder %v72_v3, %v1767_v5  ;;  %vm108_vm1 = vcmp.ge.s32.totalorder %v73_v4, %v1767_v5  ;;  %v1777_v11 = vadd.s32 32, %v1767_v5  ;;  %vm91_vm2 = vcmp.ge.s32.totalorder %v1763_v1, %v1767_v5  ;;  %p1709_p11 = por %p1708_p10, %p1707_p9 }
  0x19   :  { %vm92_vm3 = vcmp.ge.s32.totalorder %v57_v6, %v1767_v5  ;;  %vm109_vm4 = vcmp.ge.s32.totalorder %v74_v7, %v1767_v5  ;;  %vm110_vm5 = vcmp.ge.s32.totalorder %v75_v8, %v1767_v5  ;;  %vm93_vm6 = vcmp.ge.s32.totalorder %v58_v9, %v1767_v5 }
  0x1a   :  { %vm140_vm7 = vcmp.lt.s32.totalorder %v72_v3, %v1777_v11  ;;  %vm141_vm8 = vcmp.lt.s32.totalorder %v73_v4, %v1777_v11  ;;  %vm124_vm9 = vcmp.lt.s32.totalorder %v1763_v1, %v1777_v11  ;;  %v76_v13 = vadd.s32 160, %v1763_v1  ;;  %p1710_p12 = pnand %p1709_p11, %p1703_p8 }
  0x1b   :  { %vm1799_vm10 = vmand %vm107_vm0, %vm140_vm7  ;;  %vm125_vm11 = vcmp.lt.s32.totalorder %v57_v6, %v1777_v11  ;;  %vm142_vm12 = vcmp.lt.s32.totalorder %v74_v7, %v1777_v11  ;;  %vm143_vm13 = vcmp.lt.s32.totalorder %v75_v8, %v1777_v11  ;;  %vm126_vm0 = vcmp.lt.s32.totalorder %v58_v9, %v1777_v11 }
  0x1c   :  { %vm1809_vm15 = vmand %vm108_vm1, %vm141_vm8  ;;  %v1158_v17 = vsel %vm1799_vm10, 1.0, %v1731_v16  ;;  %v77_v18 = vadd.s32 168, %v1763_v1  ;;  %vm111_vm8 = vcmp.ge.s32.totalorder %v76_v13, %v1767_v5  ;;  %vm144_vm14 = vcmp.lt.s32.totalorder %v76_v13, %v1777_v11 }
  0x1d   :  { %v1159_v19 = vsel %vm1809_vm15, 1.0, %v1731_v16  ;;  %v1822_v20 = vsub.f32 %v1158_v17, %v1158_v17  ;;  %vm1830_vm1 = vmand %vm91_vm2, %vm124_vm9  ;;  %v1867_v29 = vadd.s32 32, %v1763_v1  ;;  %v1884_v34 = vadd.s32 40, %v1763_v1 }
  0x1e   :  { %v1837_v22 = vsub.f32 %v1159_v19, %v1159_v19  ;;  %vm1843_vm7 = vmand %vm92_vm3, %vm125_vm11  ;;  %v1142_v24 = vsel %vm1830_vm1, 1.0, %v1731_v16  ;;  %vm112_vm2 = vcmp.ge.s32.totalorder %v77_v18, %v1767_v5  ;;  %vm145_vm9 = vcmp.lt.s32.totalorder %v77_v18, %v1777_v11 }
  0x1f   :  { %v2713_v25 = vand.u32 4294901760, %v1822_v20  ;;  %v1143_v26 = vsel %vm1843_vm7, 1.0, %v1731_v16  ;;  %v1856_v27 = vsub.f32 %v1142_v24, %v1142_v24  ;;  %vm1862_vm3 = vmand %vm109_vm4, %vm142_vm12  ;;  %vm2738_vm12 = vcmp.ge.s32.totalorder %v59_v10, %v1767_v5 }
  0x20   :  { %v2712_v30 = vand.u32 4294901760, %v1837_v22  ;;  %v1870_v31 = vsub.f32 %v1143_v26, %v1143_v26  ;;  %vm1876_vm11 = vmand %vm110_vm5, %vm143_vm13  ;;  %v1160_v33 = vsel %vm1862_vm3, 1.0, %v1731_v16  ;;  %vm2737_vm5 = vcmp.lt.s32.totalorder %v59_v10, %v1777_v11 }
  0x21   :  { %v491_v35 = vsub.f32 %v1822_v20, %v2713_v25  ;;  %v2707_v36 = vand.u32 4294901760, %v1856_v27  ;;  %v1161_v37 = vsel %vm1876_vm11, 1.0, %v1731_v16  ;;  %v1893_v38 = vsub.f32 %v1160_v33, %v1160_v33  ;;  %vm1899_vm4 = vmand %vm93_vm6, %vm126_vm0 }
  0x22   :  { %v498_v40 = vsub.f32 %v1837_v22, %v2712_v30  ;;  %v2706_v41 = vand.u32 4294901760, %v1870_v31  ;;  %v1907_v42 = vsub.f32 %v1161_v37, %v1161_v37  ;;  %vm1913_vm13 = vmand %vm2738_vm12, %vm2737_vm5  ;;  %v1144_v44 = vsel %vm1899_vm4, 1.0, %v1731_v16 }
  0x23   :  { %v492_v45 = vand.u32 4294901760, %v491_v35  ;;  %v379_v46 = vsub.f32 %v1856_v27, %v2707_v36  ;;  %v2705_v47 = vand.u32 4294901760, %v1893_v38  ;;  %v1145_v48 = vsel %vm1913_vm13, 1.0, %v1731_v16  ;;  %vm1931_vm6 = vmpackc.low %vm1809_vm15, %vm1799_vm10 }
  0x24   :  { %v499_v50 = vand.u32 4294901760, %v498_v40  ;;  %v386_v51 = vsub.f32 %v1870_v31, %v2706_v41  ;;  %v2703_v52 = vand.u32 4294901760, %v1907_v42  ;;  %v1939_v53 = vsub.f32 %v1144_v44, %v1144_v44  ;;  %1481 = vmatprep.subr.msk.bf16.mxu0 %vm1931_vm6, %v2714_v54  ;;  %vm1948_vm10 = vmand %vm111_vm8, %vm144_vm14 }
  0x25   :  { %v380_v56 = vand.u32 4294901760, %v379_v46  ;;  %v505_v57 = vsub.f32 %v1893_v38, %v2705_v47  ;;  %v1955_v58 = vsub.f32 %v1145_v48, %v1145_v48  ;;  %vm1961_vm15 = vmand %vm112_vm2, %vm145_vm9  ;;  %v1162_v60 = vsel %vm1948_vm10, 1.0, %v1731_v16 }
  0x26   :  { %v1512_v61 = vpack.c.bf16 %v499_v50, %v492_v45  ;;  %v387_v62 = vand.u32 4294901760, %v386_v51  ;;  %v512_v63 = vsub.f32 %v1907_v42, %v2703_v52  ;;  %v2701_v0 = vand.u32 4294901760, %v1939_v53  ;;  %vm1976_vm14 = vmpackc.low %vm1843_vm7, %vm1830_vm1 }
  0x27   :  { %v506_v3 = vand.u32 4294901760, %v505_v57  ;;  %v2699_v4 = vand.u32 4294901760, %v1955_v58  ;;  %v1163_v6 = vsel %vm1961_vm15, 1.0, %v1731_v16  ;;  %v1984_v7 = vsub.f32 %v1162_v60, %v1162_v60  ;;  %1483 = vmatpush3.bf16.msk.msra.mxu0 %vm1976_vm14, %v2714_v54  ;;  %vm1993_vm0 = vmpackc.low %vm1876_vm11, %vm1862_vm3 }
  0x28   :  { %1513 = vmatprep.subr.bf16.mxu1 %v1512_v61  ;;  %v1514_v9 = vpack.c.bf16 %v387_v62, %v380_v56  ;;  %v513_v10 = vand.u32 4294901760, %v512_v63  ;;  %v393_v13 = vsub.f32 %v1939_v53, %v2701_v0  ;;  %v2000_v14 = vsub.f32 %v1163_v6, %v1163_v6  ;;  %1485 = vmatprep.subr.msk.bf16.mxu0 %vm1993_vm0, %v2714_v54  ;;  %vm2009_vm7 = vmpackc.low %vm1913_vm13, %vm1899_vm4 }
  0x29   :  { %v400_v17 = vsub.f32 %v1955_v58, %v2699_v4  ;;  %v2697_v18 = vand.u32 4294901760, %v1984_v7  ;;  %vm95_vm1 = vcmp.ge.s32.totalorder %v1867_v29, %v1767_v5  ;;  %vm96_vm8 = vcmp.ge.s32.totalorder %v1884_v34, %v1767_v5  ;;  %vm2025_vm2 = vmpackc.low %vm1961_vm15, %vm1948_vm10 }
  0x2a   :  { %1515 = vmatpush3.bf16.msra.mxu1 %v1514_v9  ;;  %v1516_v21 = vpack.c.bf16 %v513_v10, %v506_v3  ;;  %v394_v23 = vand.u32 4294901760, %v393_v13  ;;  %v2696_v24 = vand.u32 4294901760, %v2000_v14  ;;  %vm128_vm9 = vcmp.lt.s32.totalorder %v1867_v29, %v1777_v11 }
  0x2b   :  { %v401_v26 = vand.u32 4294901760, %v400_v17  ;;  %v519_v28 = vsub.f32 %v1984_v7, %v2697_v18  ;;  %vm129_vm3 = vcmp.lt.s32.totalorder %v1884_v34, %v1777_v11  ;;  %vm160_vm11 = vmand %vm95_vm1, %vm128_vm9  ;;  %v78_v32 = vadd.s32 176, %v1763_v1  ;;  %1487 = vmatpush3.bf16.msk.msra.mxu0 %vm2009_vm7, %v2714_v54 }
  0x2c   :  { %1517 = vmatprep.subr.bf16.mxu1 %v1516_v21  ;;  %v526_v29 = vsub.f32 %v2000_v14, %v2696_v24  ;;  %vm161_vm4 = vmand %vm96_vm8, %vm129_vm3  ;;  %v1146_v33 = vsel %vm160_vm11, 1.0, %v1731_v16  ;;  %v79_v35 = vadd.s32 184, %v1763_v1  ;;  %v62_v37 = vadd.s32 48, %v1763_v1  ;;  %1489 = vmatprep.subr.msk.bf16.mxu0 %vm2025_vm2, %v2714_v54 }
  0x2d   :  { %v1518_v39 = vpack.c.bf16 %v401_v26, %v394_v23  ;;  %v520_v40 = vand.u32 4294901760, %v519_v28  ;;  %v1147_v43 = vsel %vm161_vm4, 1.0, %v1731_v16  ;;  %v2054_v44 = vsub.f32 %v1146_v33, %v1146_v33  ;;  %vm2056_vm5 = vmpackc.low %vm161_vm4, %vm160_vm11 }
  0x2e   :  { %v527_v34 = vand.u32 4294901760, %v526_v29  ;;  %v2060_v46 = vsub.f32 %v1147_v43, %v1147_v43  ;;  %vm113_vm12 = vcmp.ge.s32.totalorder %v78_v32, %v1767_v5  ;;  %vm114_vm13 = vcmp.ge.s32.totalorder %v79_v35, %v1767_v5 }
  0x2f   :  { %1519 = vmatpush3.bf16.msra.mxu1 %v1518_v39  ;;  %v2693_v48 = vand.u32 4294901760, %v2054_v44  ;;  %vm146_vm10 = vcmp.lt.s32.totalorder %v78_v32, %v1777_v11  ;;  %vm147_vm15 = vcmp.lt.s32.totalorder %v79_v35, %v1777_v11  ;;  %v63_v50 = vadd.s32 56, %v1763_v1  ;;  %1491 = vmatpush3.bf16.msk.msra.mxu0 %vm2056_vm5, %v2714_v54 }
  0x30   :  { %v1520_v51 = vpack.c.bf16 %v527_v34, %v520_v40  ;;  %v2692_v55 = vand.u32 4294901760, %v2060_v46  ;;  %vm2072_vm1 = vmand %vm113_vm12, %vm146_vm10  ;;  %vm97_vm8 = vcmp.ge.s32.totalorder %v62_v37, %v1767_v5  ;;  %vm130_vm9 = vcmp.lt.s32.totalorder %v62_v37, %v1777_v11 }
  0x31   :  { %v407_v57 = vsub.f32 %v2054_v44, %v2693_v48  ;;  %vm2081_vm3 = vmand %vm114_vm13, %vm147_vm15  ;;  %v1164_v60 = vsel %vm2072_vm1, 1.0, %v1731_v16  ;;  %vm98_vm11 = vcmp.ge.s32.totalorder %v63_v50, %v1767_v5  ;;  %vm131_vm4 = vcmp.lt.s32.totalorder %v63_v50, %v1777_v11 }
  0x32   :  { %1521 = vmatprep.subr.bf16.mxu1 %v1520_v51  ;;  %v414_v61 = vsub.f32 %v2060_v46, %v2692_v55  ;;  %v1165_v62 = vsel %vm2081_vm3, 1.0, %v1731_v16  ;;  %v2096_v63 = vsub.f32 %v1164_v60, %v1164_v60  ;;  %vm2098_vm12 = vmand %vm97_vm8, %vm130_vm9  ;;  %v80_v6 = vadd.s32 192, %v1763_v1 }
  0x33   :  { %v408_v9 = vand.u32 4294901760, %v407_v57  ;;  %v2103_v10 = vsub.f32 %v1165_v62, %v1165_v62  ;;  %vm163_vm13 = vmand %vm98_vm11, %vm131_vm4  ;;  %v1148_v13 = vsel %vm2098_vm12, 1.0, %v1731_v16  ;;  %v81_v17 = vadd.s32 200, %v1763_v1 }
  0x34   :  { %v415_v21 = vand.u32 4294901760, %v414_v61  ;;  %v2691_v23 = vand.u32 4294901760, %v2096_v63  ;;  %v1149_v26 = vsel %vm163_vm13, 1.0, %v1731_v16  ;;  %v2111_v28 = vsub.f32 %v1148_v13, %v1148_v13  ;;  %vm2117_vm10 = vmpackc.low %vm2081_vm3, %vm2072_vm1 }
  0x35   :  { %v2682_v29 = vand.u32 4294901760, %v2103_v10  ;;  %v2122_v33 = vsub.f32 %v1149_v26, %v1149_v26  ;;  %vm115_vm15 = vcmp.ge.s32.totalorder %v80_v6, %v1767_v5  ;;  %vm116_vm8 = vcmp.ge.s32.totalorder %v81_v17, %v1767_v5  ;;  %1493 = vmatprep.subr.msk.bf16.mxu0 %vm2117_vm10, %v2714_v54  ;;  %vm2131_vm9 = vmpackc.low %vm163_vm13, %vm2098_vm12 }
  0x36   :  { %v2765_v35 = vmov 0  ;;  %v1522_v37 = vpack.c.bf16 %v415_v21, %v408_v9  ;;  %v533_v39 = vsub.f32 %v2096_v63, %v2691_v23  ;;  %v2679_v40 = vand.u32 4294901760, %v2111_v28  ;;  %1495 = vmatpush3.bf16.msk.msra.mxu0 %vm2131_vm9, %v2714_v54 }
  0x37   :  { %v2766_v35 = vsel %vm2131_vm9, 4294967295, %v2765_v35  ;;  %vm148_vm1 = vcmp.lt.s32.totalorder %v80_v6, %v1777_v11  ;;  %v540_v43 = vsub.f32 %v2103_v10, %v2682_v29  ;;  %v2678_v34 = vand.u32 4294901760, %v2122_v33 }
  0x38   :  { %vm149_vm3 = vcmp.lt.s32.totalorder %v81_v17, %v1777_v11  ;;  %vm180_vm11 = vmand %vm115_vm15, %vm148_vm1  ;;  %v64_v50 = vadd.s32 64, %v1763_v1  ;;  %1523 = vmatpush3.bf16.msra.mxu1 %v1522_v37  ;;  %v534_v51 = vand.u32 4294901760, %v533_v39  ;;  %v421_v56 = vsub.f32 %v2111_v28, %v2679_v40 }
  0x39   :  { %vm181_vm4 = vmand %vm116_vm8, %vm149_vm3  ;;  %v1166_v57 = vsel %vm180_vm11, 1.0, %v1731_v16  ;;  %v65_v59 = vadd.s32 72, %v1763_v1  ;;  %v541_v60 = vand.u32 4294901760, %v540_v43  ;;  %v428_v61 = vsub.f32 %v2122_v33, %v2678_v34 }
  0x3a   :  { %v1167_v62 = vsel %vm181_vm4, 1.0, %v1731_v16  ;;  %v2160_v3 = vsub.f32 %v1166_v57, %v1166_v57  ;;  %vm2162_vm12 = vmpackc.low %vm181_vm4, %vm180_vm11  ;;  %v2767_v6 = vmov 0  ;;  %v422_v9 = vand.u32 4294901760, %v421_v56 }
  0x3b   :  { %v2768_v6 = vsel %vm2162_vm12, 4294967295, %v2767_v6  ;;  %v2166_v13 = vsub.f32 %v1167_v62, %v1167_v62  ;;  %vm99_vm13 = vcmp.ge.s32.totalorder %v64_v50, %v1767_v5  ;;  %vm100_vm15 = vcmp.ge.s32.totalorder %v65_v59, %v1767_v5  ;;  %1497 = vmatprep.subr.msk.bf16.mxu0 %vm2162_vm12, %v2714_v54 }
  0x3c   :  { %v1524_v17 = vpack.c.bf16 %v541_v60, %v534_v51  ;;  %v429_v21 = vand.u32 4294901760, %v428_v61  ;;  %v2677_v26 = vand.u32 4294901760, %v2160_v3  ;;  %vm132_vm8 = vcmp.lt.s32.totalorder %v64_v50, %v1777_v11 }
  0x3d   :  { %v2676_v37 = vand.u32 4294901760, %v2166_v13  ;;  %vm133_vm1 = vcmp.lt.s32.totalorder %v65_v59, %v1777_v11  ;;  %vm164_vm3 = vmand %vm99_vm13, %vm132_vm8  ;;  %v82_v39 = vadd.s32 208, %v1763_v1  ;;  %v83_v57 = vadd.s32 216, %v1763_v1 }
  0x3e   :  { %1525 = vmatprep.subr.bf16.mxu1 %v1524_v17  ;;  %v1526_v43 = vpack.c.bf16 %v429_v21, %v422_v9  ;;  %v547_v56 = vsub.f32 %v2160_v3, %v2677_v26  ;;  %vm165_vm11 = vmand %vm100_vm15, %vm133_vm1  ;;  %v1150_v51 = vsel %vm164_vm3, 1.0, %v1731_v16  ;;  %v2769_v61 = vmov 0 }
  0x3f   :  { %v554_v50 = vsub.f32 %v2166_v13, %v2676_v37  ;;  %v1151_v59 = vsel %vm165_vm11, 1.0, %v1731_v16  ;;  %v2187_v60 = vsub.f32 %v1150_v51, %v1150_v51  ;;  %vm2189_vm4 = vmpackc.low %vm165_vm11, %vm164_vm3  ;;  %vm117_vm13 = vcmp.ge.s32.totalorder %v82_v39, %v1767_v5 }
  0x40   :  { %v2770_v61 = vsel %vm2189_vm4, 4294967295, %v2769_v61  ;;  %1527 = vmatpush3.bf16.msra.mxu1 %v1526_v43  ;;  %v548_v62 = vand.u32 4294901760, %v547_v56  ;;  %v2193_v9 = vsub.f32 %v1151_v59, %v1151_v59  ;;  %vm118_vm15 = vcmp.ge.s32.totalorder %v83_v57, %v1767_v5  ;;  %1499 = vmatpush3.bf16.msk.msra.mxu0 %vm2189_vm4, %v2714_v54 }
  0x41   :  { %v555_v17 = vand.u32 4294901760, %v554_v50  ;;  %v2680_v21 = vand.u32 4294901760, %v2187_v60  ;;  %vm150_vm8 = vcmp.lt.s32.totalorder %v82_v39, %v1777_v11  ;;  %vm151_vm1 = vcmp.lt.s32.totalorder %v83_v57, %v1777_v11 }
  0x42   :  { %v2681_v43 = vand.u32 4294901760, %v2193_v9  ;;  %vm182_vm3 = vmand %vm117_vm13, %vm150_vm8  ;;  %v66_v56 = vadd.s32 80, %v1763_v1  ;;  %v67_v51 = vadd.s32 88, %v1763_v1  ;;  %v84_v59 = vadd.s32 224, %v1763_v1 }
  0x43   :  { %v1528_v37 = vpack.c.bf16 %v555_v17, %v548_v62  ;;  %v435_v50 = vsub.f32 %v2187_v60, %v2680_v21  ;;  %vm183_vm11 = vmand %vm118_vm15, %vm151_vm1  ;;  %v1168_v26 = vsel %vm182_vm3, 1.0, %v1731_v16  ;;  %v85_v39 = vadd.s32 232, %v1763_v1 }
  0x44   :  { %v442_v57 = vsub.f32 %v2193_v9, %v2681_v43  ;;  %v1169_v34 = vsel %vm183_vm11, 1.0, %v1731_v16  ;;  %v2216_v40 = vsub.f32 %v1168_v26, %v1168_v26  ;;  %vm101_vm13 = vcmp.ge.s32.totalorder %v66_v56, %v1767_v5  ;;  %vm2219_vm8 = vmpackc.low %vm183_vm11, %vm182_vm3 }
  0x45   :  { %v2771_v62 = vmov 0  ;;  %1529 = vmatprep.subr.bf16.mxu1 %v1528_v37  ;;  %v436_v17 = vand.u32 4294901760, %v435_v50  ;;  %v2223_v21 = vsub.f32 %v1169_v34, %v1169_v34  ;;  %vm102_vm15 = vcmp.ge.s32.totalorder %v67_v51, %v1767_v5  ;;  %1501 = vmatprep.subr.msk.bf16.mxu0 %vm2219_vm8, %v2714_v54 }
  0x46   :  { %v2772_v62 = vsel %vm2219_vm8, 4294967295, %v2771_v62  ;;  %vm134_vm1 = vcmp.lt.s32.totalorder %v66_v56, %v1777_v11  ;;  %v443_v26 = vand.u32 4294901760, %v442_v57  ;;  %v2695_v43 = vand.u32 4294901760, %v2216_v40 }
  0x47   :  { %vm135_vm3 = vcmp.lt.s32.totalorder %v67_v51, %v1777_v11  ;;  %vm2232_vm11 = vmand %vm101_vm13, %vm134_vm1  ;;  %vm119_vm4 = vcmp.ge.s32.totalorder %v84_v59, %v1767_v5  ;;  %v2694_v34 = vand.u32 4294901760, %v2223_v21  ;;  %vm120_vm8 = vcmp.ge.s32.totalorder %v85_v39, %v1767_v5 }
  0x48   :  { %vm167_vm12 = vmand %vm102_vm15, %vm135_vm3  ;;  %v1152_v37 = vsel %vm2232_vm11, 1.0, %v1731_v16  ;;  %vm152_vm9 = vcmp.lt.s32.totalorder %v84_v59, %v1777_v11  ;;  %v1530_v56 = vpack.c.bf16 %v443_v26, %v436_v17  ;;  %v561_v51 = vsub.f32 %v2216_v40, %v2695_v43 }
  0x49   :  { %v1153_v50 = vsel %vm167_vm12, 1.0, %v1731_v16  ;;  %v2247_v57 = vsub.f32 %v1152_v37, %v1152_v37  ;;  %vm2249_vm13 = vmand %vm119_vm4, %vm152_vm9  ;;  %v568_v55 = vsub.f32 %v2223_v21, %v2694_v34  ;;  %vm153_vm15 = vcmp.lt.s32.totalorder %v85_v39, %v1777_v11 }
  0x4a   :  { %v2256_v48 = vsub.f32 %v1153_v50, %v1153_v50  ;;  %v1170_v59 = vsel %vm2249_vm13, 1.0, %v1731_v16  ;;  %vm2264_vm1 = vmpackc.low %vm167_vm12, %vm2232_vm11  ;;  %1531 = vmatpush3.bf16.msra.mxu1 %v1530_v56  ;;  %v562_v26 = vand.u32 4294901760, %v561_v51  ;;  %v68_v34 = vadd.s32 96, %v1763_v1 }
  0x4b   :  { %v2698_v37 = vand.u32 4294901760, %v2247_v57  ;;  %vm185_vm9 = vmand %vm120_vm8, %vm153_vm15  ;;  %v2271_v50 = vsub.f32 %v1170_v59, %v1170_v59  ;;  %1503 = vmatpush3.bf16.msk.msra.mxu0 %vm2264_vm1, %v2714_v54  ;;  %v569_v29 = vand.u32 4294901760, %v568_v55  ;;  %v69_v56 = vadd.s32 104, %v1763_v1 }
  0x4c   :  { %v2700_v43 = vand.u32 4294901760, %v2256_v48  ;;  %v1171_v24 = vsel %vm185_vm9, 1.0, %v1731_v16  ;;  %vm2282_vm12 = vmpackc.low %vm185_vm9, %vm2249_vm13  ;;  %vm103_vm4 = vcmp.ge.s32.totalorder %v68_v34, %v1767_v5  ;;  %vm136_vm3 = vcmp.lt.s32.totalorder %v68_v34, %v1777_v11 }
  0x4d   :  { %v449_v51 = vsub.f32 %v2247_v57, %v2698_v37  ;;  %v2702_v59 = vand.u32 4294901760, %v2271_v50  ;;  %v2290_v18 = vsub.f32 %v1171_v24, %v1171_v24  ;;  %1505 = vmatprep.subr.msk.bf16.mxu0 %vm2282_vm12, %v2714_v54  ;;  %v1532_v55 = vpack.c.bf16 %v569_v29, %v562_v26  ;;  %vm168_vm13 = vmand %vm103_vm4, %vm136_vm3 }
  0x4e   :  { %v456_v23 = vsub.f32 %v2256_v48, %v2700_v43  ;;  %vm104_vm8 = vcmp.ge.s32.totalorder %v69_v56, %v1767_v5  ;;  %vm137_vm11 = vcmp.lt.s32.totalorder %v69_v56, %v1777_v11  ;;  %v1154_v29 = vsel %vm168_vm13, 1.0, %v1731_v16 }
  0x4f   :  { %v450_v37 = vand.u32 4294901760, %v449_v51  ;;  %v575_v24 = vsub.f32 %v2271_v50, %v2702_v59  ;;  %v2704_v4 = vand.u32 4294901760, %v2290_v18  ;;  %1533 = vmatprep.subr.bf16.mxu1 %v1532_v55  ;;  %vm169_vm15 = vmand %vm104_vm8, %vm137_vm11  ;;  %v86_v43 = vadd.s32 240, %v1763_v1 }
  0x50   :  { %v457_v26 = vand.u32 4294901760, %v456_v23  ;;  %v87_v0 = vadd.s32 248, %v1763_v1  ;;  %v1155_v59 = vsel %vm169_vm15, 1.0, %v1731_v16  ;;  %v2313_v52 = vsub.f32 %v1154_v29, %v1154_v29  ;;  %vm2315_vm9 = vmpackc.low %vm169_vm15, %vm168_vm13 }
  0x51   :  { %v576_v34 = vand.u32 4294901760, %v575_v24  ;;  %v582_v51 = vsub.f32 %v2290_v18, %v2704_v4  ;;  %v2781_v56 = vmov 0  ;;  %v2319_v23 = vsub.f32 %v1155_v59, %v1155_v59  ;;  %1507 = vmatpush3.bf16.msk.msra.mxu0 %vm2315_vm9, %v2714_v54 }
  0x52   :  { %v2782_v56 = vsel %vm2315_vm9, 4294967295, %v2781_v56  ;;  %v1534_v55 = vpack.c.bf16 %v457_v26, %v450_v37  ;;  %vm121_vm4 = vcmp.ge.s32.totalorder %v86_v43, %v1767_v5  ;;  %vm122_vm8 = vcmp.ge.s32.totalorder %v87_v0, %v1767_v5 }
  0x53   :  { %2783 = vst [vmem:[#allocation8_spill] sm:$0xff] %v2782_v56  ;;  %v583_v24 = vand.u32 4294901760, %v582_v51  ;;  %v2708_v4 = vand.u32 4294901760, %v2313_v52  ;;  %vm154_vm3 = vcmp.lt.s32.totalorder %v86_v43, %v1777_v11  ;;  %vm155_vm11 = vcmp.lt.s32.totalorder %v87_v0, %v1777_v11 }
  0x54   :  { %1535 = vmatpush3.bf16.msra.mxu1 %v1534_v55  ;;  %v2711_v37 = vand.u32 4294901760, %v2319_v23  ;;  %vm186_vm13 = vmand %vm121_vm4, %vm154_vm3  ;;  %v70_v59 = vadd.s32 112, %v1763_v1  ;;  %v71_v26 = vadd.s32 120, %v1763_v1  ;;  %v1544_v29 = vpack.c.bf16 %v1837_v22, %v1822_v20 }
  0x55   :  { %v1536_v47 = vpack.c.bf16 %v583_v24, %v576_v34  ;;  %v463_v51 = vsub.f32 %v2313_v52, %v2708_v4  ;;  %vm187_vm15 = vmand %vm122_vm8, %vm155_vm11  ;;  %v1172_v43 = vsel %vm186_vm13, 1.0, %v1731_v16  ;;  %v2785_v34 = vmov 0 }
  0x56   :  { %v470_v55 = vsub.f32 %v2319_v23, %v2711_v37  ;;  %v1173_v41 = vsel %vm187_vm15, 1.0, %v1731_v16  ;;  %v2344_v36 = vsub.f32 %v1172_v43, %v1172_v43  ;;  %vm105_vm4 = vcmp.ge.s32.totalorder %v70_v59, %v1767_v5  ;;  %vm2347_vm3 = vmpackc.low %vm187_vm15, %vm186_vm13 }
  0x57   :  { %v2786_v34 = vsel %vm2347_vm3, 4294967295, %v2785_v34  ;;  %1537 = vmatprep.subr.bf16.mxu1 %v1536_v47  ;;  %v464_v24 = vand.u32 4294901760, %v463_v51  ;;  %v2351_v4 = vsub.f32 %v1173_v41, %v1173_v41  ;;  %vm106_vm8 = vcmp.ge.s32.totalorder %v71_v26, %v1767_v5  ;;  %1509 = vmatprep.subr.msk.bf16.mxu0 %vm2347_vm3, %v2714_v54 }
  0x58   :  { %2784 = vst [vmem:[#allocation9_spill] sm:$0xff] %v2344_v36  ;;  %2787 = vst [vmem:[#allocation10_spill] sm:$0xff] %v2786_v34  ;;  %vm138_vm11 = vcmp.lt.s32.totalorder %v70_v59, %v1777_v11  ;;  %v471_v43 = vand.u32 4294901760, %v470_v55  ;;  %v588_v0 = vand.u32 4294901760, %v2344_v36  ;;  %vm139_vm13 = vcmp.lt.s32.totalorder %v71_v26, %v1777_v11 }
  0x59   :  { %vm170_vm15 = vmand %vm105_vm4, %vm138_vm11  ;;  %v595_v41 = vand.u32 4294901760, %v2351_v4  ;;  %v2788_v47 = vmov 0  ;;  %v2791_v34 = vand.u32 4294901760, %v1822_v20  ;;  %v2800_v20 = vand.u32 4294901760, %v1939_v53 }
  0x5a   :  { %vm171_vm9 = vmand %vm106_vm8, %vm139_vm13  ;;  %v1156_v5 = vsel %vm170_vm15, 1.0, %v1731_v16  ;;  %v1538_v55 = vpack.c.bf16 %v471_v43, %v464_v24  ;;  %v589_v37 = vsub.f32 %v2344_v36, %v588_v0  ;;  %v2798_v24 = vand.u32 4294901760, %v1907_v42 }
  0x5b   :  { %v1157_v11 = vsel %vm171_vm9, 1.0, %v1731_v16  ;;  %v2370_v26 = vsub.f32 %v1156_v5, %v1156_v5  ;;  %vm2372_vm4 = vmpackc.low %vm171_vm9, %vm170_vm15  ;;  %v596_v30 = vsub.f32 %v2351_v4, %v595_v41  ;;  %v2804_v16 = vand.u32 4294901760, %v2000_v14 }
  0x5c   :  { %v2789_v47 = vsel %vm2372_vm4, 4294967295, %v2788_v47  ;;  %v2377_v25 = vsub.f32 %v1157_v11, %v1157_v11  ;;  %1511 = vmatpush3.bf16.msk.msra.mxu0 %vm2372_vm4, %v2714_v54  ;;  %1539 = vmatpush3.bf16.msra.mxu1 %v1538_v55  ;;  %v590_v43 = vand.u32 4294901760, %v589_v37  ;;  %v2794_v55 = vand.u32 4294901760, %v1856_v27 }
  0x5d   :  { %2790 = vst [vmem:[#allocation11_spill] sm:$0xff] %v2789_v47  ;;  %v476_v5 = vand.u32 4294901760, %v2370_v26  ;;  %1545 = vmatprep.subr.bf16.mxu0 %v1544_v29  ;;  %v597_v59 = vand.u32 4294901760, %v596_v30  ;;  %v2792_v29 = vand.u32 4294901760, %v1837_v22  ;;  %v2795_v11 = vand.u32 4294901760, %v1870_v31 }
  0x5e   :  { %v483_v54 = vand.u32 4294901760, %v2377_v25  ;;  %v2801_v22 = vand.u32 4294901760, %v1955_v58  ;;  %vm38_vm9 = vcmask 261120   ;;  %vm40_vm8 = vcmask 523264  }
  0x5f   :  { %v477_v37 = vsub.f32 %v2370_v26, %v476_v5  ;;  %v1540_v30 = vpack.c.bf16 %v597_v59, %v590_v43  ;;  %v2412_v56 = vpack.c.bf16 %v2792_v29, %v2791_v34  ;;  %v2418_v59 = vpack.c.bf16 %v2795_v11, %v2794_v55 }
  0x60   :  { %v484_v51 = vsub.f32 %v2377_v25, %v483_v54  ;;  %v2797_v43 = vand.u32 4294901760, %v1893_v38  ;;  %v2430_v34 = vpack.c.bf16 %v2801_v22, %v2800_v20  ;;  %v2803_v29 = vand.u32 4294901760, %v1984_v7 }
  0x61   :  { %v478_v47 = vand.u32 4294901760, %v477_v37  ;;  %2793 = vst [vmem:[#allocation12_spill] sm:$0xff] %v2412_v56  ;;  %2796 = vst [vmem:[#allocation13_spill] sm:$0xff] %v2418_v59  ;;  %1541 = vmatprep.subr.bf16.mxu1 %v1540_v30  ;;  %v2806_v55 = vand.u32 4294901760, %v2054_v44  ;;  %v2807_v59 = vand.u32 4294901760, %v2060_v46  ;;  %v2810_v30 = vand.u32 4294901760, %v2103_v10 }
  0x62   :  { %v2424_v36 = vpack.c.bf16 %v2798_v24, %v2797_v43  ;;  %v485_v37 = vand.u32 4294901760, %v484_v51  ;;  %2802 = vst [vmem:[#allocation15_spill] sm:$0xff] %v2430_v34  ;;  %v2436_v11 = vpack.c.bf16 %v2804_v16, %v2803_v29  ;;  %v2809_v51 = vand.u32 4294901760, %v2096_v63 }
  0x63   :  { %v2442_v24 = vpack.c.bf16 %v2807_v59, %v2806_v55  ;;  %v2812_v20 = vand.u32 4294901760, %v2111_v28  ;;  %v2813_v22 = vand.u32 4294901760, %v2122_v33  ;;  %v2815_v16 = vand.u32 4294901760, %v2160_v3 }
  0x64   :  { %2799 = vst [vmem:[#allocation14_spill] sm:$0xff] %v2424_v36  ;;  %2805 = vst [vmem:[#allocation16_spill] sm:$0xff] %v2436_v11  ;;  %v2448_v43 = vpack.c.bf16 %v2810_v30, %v2809_v51  ;;  %v2816_v29 = vand.u32 4294901760, %v2166_v13  ;;  %v2818_v59 = vand.u32 4294901760, %v2187_v60  ;;  %v2819_v55 = vand.u32 4294901760, %v2193_v9 }
  0x65   :  { %2808 = vst [vmem:[#allocation17_spill] sm:$0xff] %v2442_v24  ;;  %v2454_v34 = vpack.c.bf16 %v2813_v22, %v2812_v20  ;;  %v1542_v51 = vpack.c.bf16 %v485_v37, %v478_v47  ;;  %v2821_v30 = vand.u32 4294901760, %v2216_v40  ;;  %v2824_v20 = vand.u32 4294901760, %v2247_v57 }
  0x66   :  { %2811 = vst [vmem:[#allocation18_spill] sm:$0xff] %v2448_v43  ;;  %v2460_v11 = vpack.c.bf16 %v2816_v29, %v2815_v16  ;;  %v2466_v24 = vpack.c.bf16 %v2819_v55, %v2818_v59  ;;  %v2822_v43 = vand.u32 4294901760, %v2223_v21  ;;  %v2825_v22 = vand.u32 4294901760, %v2256_v48 }
  0x67   :  { %2814 = vst [vmem:[#allocation19_spill] sm:$0xff] %v2454_v34  ;;  %v2827_v16 = vand.u32 4294901760, %v2271_v50  ;;  %v2828_v29 = vand.u32 4294901760, %v2290_v18  ;;  %v2830_v47 = vand.u32 4294901760, %v2313_v52  ;;  %v2831_v37 = vand.u32 4294901760, %v2319_v23  ;;  %1543 = vmatpush3.bf16.msra.mxu1 %v1542_v51 }
  0x68   :  { %2817 = vst [vmem:[#allocation20_spill] sm:$0xff] %v2460_v11  ;;  %2820 = vst [vmem:[#allocation21_spill] sm:$0xff] %v2466_v24  ;;  %v2472_v36 = vpack.c.bf16 %v2822_v43, %v2821_v30  ;;  %v2478_v34 = vpack.c.bf16 %v2825_v22, %v2824_v20  ;;  %v2492_v43 = vpack.c.bf16 %v595_v41, %v588_v0  ;;  %v2835_v30 = vmov 1.0|1.0   ;;  %v27_v51 = vld [vmem:[#allocation2] sm:$0xf] }
  0x69   :  { %v2484_v11 = vpack.c.bf16 %v2828_v29, %v2827_v16  ;;  %v2490_v59 = vpack.c.bf16 %v2831_v37, %v2830_v47  ;;  %v2494_v55 = vpack.c.bf16 %v483_v54, %v476_v5  ;;  %1577 = vmatprep.subr.msk.bf16.mxu1 %vm1931_vm6, %v2835_v30  ;;  %v1734_v20 = vmov 1983009808   ;;  %v2861_v2 = vld [vmem:[#allocation13_spill] sm:$0xff] }
  0x6a   :  { %2823 = vst [vmem:[#allocation22_spill] sm:$0xff] %v2472_v36  ;;  %2826 = vst [vmem:[#allocation23_spill] sm:$0xff] %v2478_v34  ;;  %v47_v22 = vunpack.c.l.s4 %v1734_v20  ;;  %vm42_vm11 = vcmask 785408   ;;  %vm2839_vm13 = vnez %v2766_v35  ;;  %vm2841_vm15 = vnez %v2768_v6 }
  0x6b   :  { %2829 = vst [vmem:[#allocation24_spill] sm:$0xff] %v2484_v11  ;;  %2832 = vst [vmem:[#allocation25_spill] sm:$0xff] %v2490_v59  ;;  %v2859_v49 = vpack.c.bf16 %v2377_v25, %v2370_v26  ;;  %v2862_v25 = vld [vmem:[#allocation14_spill] sm:$0xff]  ;;  %v2864_v8 = vld [vmem:[#allocation16_spill] sm:$0xff] }
  0x6c   :  { %2833 = vst [vmem:[#allocation26_spill] sm:$0xff] %v2492_v43  ;;  %2834 = vst [vmem:[#allocation27_spill] sm:$0xff] %v2494_v55  ;;  %v48_v16 = vunpack.c.0.s8 %v47_v22 }
  0x6d   :  { %v2866_v15 = vld [vmem:[#allocation18_spill] sm:$0xff] }
  0x6e   :  { %v51_v54 = vsub.s32 %v48_v16, %v1763_v1  ;;  %v2838_v16 = vpack.c.bf16 %v1955_v58, %v1939_v53  ;;  %v2847_v53 = vpack.c.bf16 %v2166_v13, %v2160_v3  ;;  %v2848_v58 = vpack.c.bf16 %v2193_v9, %v2187_v60 }
  0x6f   :  { %v2868_v19 = vld [vmem:[#allocation20_spill] sm:$0xff]  ;;  %v2869_v45 = vld [vmem:[#allocation21_spill] sm:$0xff] }
  0x71   :  { %v2870_v32 = vld [vmem:[#allocation22_spill] sm:$0xff]  ;;  %v2871_v35 = vld [vmem:[#allocation23_spill] sm:$0xff] }
  0x72   :  { %v2873_v3 = vld [vmem:[#allocation25_spill] sm:$0xff] }
  0x73   :  { %v2874_v6 = vld [vmem:[#allocation26_spill] sm:$0xff]  ;;  %v2875_v13 = vld [vmem:[#allocation27_spill] sm:$0xff] }
  0x85   :  { %v30_v34 = vpop.permute.xlu0 %29  ;;  %v36_v29 = vpop.permute.xlu1 %35 }
  0x86   :  { %v39_v47 = vsel %vm38_vm9, %v1784_v12, %v30_v34  ;;  %vm2843_vm9 = vnez %v2770_v61 }
  0x89   :  { %v33_v37 = vpop.permute.xlu0 %32 }
  0x8a   :  { %v41_v0 = vsel %vm40_vm8, %v39_v47, %v33_v37  ;;  %vm2845_vm8 = vnez %v2772_v62 }
  0x8b   :  { %v43_v41 = vsel %vm42_vm11, %v41_v0, %v36_v29 }
  0x8c   :  { %v45_v5 = vcombine.low %v43_v41, %v43_v41 }
  0x8e   :  { %v52_v55 = vrot.slane %v45_v5, %v51_v54 }
  0x90   :  { %v54_v43 = vmul.f32 %v52_v55, %v27_v51  ;;  %v2837_v55 = vpack.c.bf16 %v1907_v42, %v1893_v38  ;;  %v2844_v38 = vpack.c.bf16 %v2103_v10, %v2096_v63  ;;  %v2846_v42 = vpack.c.bf16 %v2122_v33, %v2111_v28 }
  0x91   :  { %v2855_v10 = vpack.c.bf16 %v2290_v18, %v2271_v50  ;;  %v2856_v28 = vpack.c.bf16 %v2319_v23, %v2313_v52  ;;  %v2860_v52 = vld [vmem:[#allocation12_spill] sm:$0xff]  ;;  %v2867_v18 = vld [vmem:[#allocation19_spill] sm:$0xff] }
  0x92   :  { %v259_v59 = vrot.slane %v54_v43, %v51_v54  ;;  %v2836_v43 = vpack.c.bf16 %v1870_v31, %v1856_v27  ;;  %v2840_v27 = vpack.c.bf16 %v2000_v14, %v1984_v7  ;;  %v2842_v31 = vpack.c.bf16 %v2060_v46, %v2054_v44  ;;  %v2849_v7 = vld [vmem:[#allocation8_spill] sm:$0xff] }
  0x93   :  { %vm2850_vm11 = vnez %v2849_v7  ;;  %v2851_v14 = vpack.c.bf16 %v2223_v21, %v2216_v40  ;;  %v2853_v46 = vpack.c.bf16 %v2256_v48, %v2247_v57  ;;  %v2857_v48 = vld [vmem:[#allocation9_spill] sm:$0xff]  ;;  %v2872_v40 = vld [vmem:[#allocation24_spill] sm:$0xff] }
  0x94   :  { %v260_v11 = vcombine.high %v259_v59, %v259_v59  ;;  %v2501_v20 = vand.u32 4294901760, %v259_v59  ;;  %v2858_v33 = vpack.c.bf16 %v2351_v4, %v2857_v48  ;;  %v2863_v4 = vld [vmem:[#allocation15_spill] sm:$0xff] }
  0x96   :  { %v359_v36 = vand.u32 4294901760, %v260_v11  ;;  %v366_v22 = vsub.f32 %v259_v59, %v2501_v20 }
  0x98   :  { %600 = vmatprep.mubr.f32.mxu1 %v359_v36  ;;  %v360_v24 = vsub.f32 %v260_v11, %v359_v36  ;;  %v367_v56 = vand.u32 4294901760, %v366_v22 }
  0x99   :  { %602 = vmatmul.mubr.f32.vlgmr.msra.gmra.mrb[0].mxu1 %v2501_v20 }
  0x9a   :  { %1579 = vmatpush3.bf16.msk.msra.mxu1 %vm1976_vm14, %v2835_v30  ;;  %v361_v1 = vand.u32 4294901760, %v360_v24  ;;  %v368_v12 = vsub.f32 %v366_v22, %v367_v56 }
  0x9b   :  { %1581 = vmatprep.subr.msk.bf16.mxu1 %vm1993_vm0, %v2835_v30 }
  0x9c   :  { %844 = vmatprep.mubr.f32.mxu1 %v361_v1  ;;  %v362_v34 = vsub.f32 %v360_v24, %v361_v1  ;;  %v369_v59 = vand.u32 4294901760, %v368_v12 }
  0x9e   :  { %1583 = vmatpush3.bf16.msk.msra.mxu1 %vm2009_vm7, %v2835_v30  ;;  %v363_v11 = vand.u32 4294901760, %v362_v34 }
  0x9f   :  { %1585 = vmatprep.subr.msk.bf16.mxu1 %vm2025_vm2, %v2835_v30 }
  0xa0   :  { %364 = vmatprep.mubr.f32.mxu0 %v363_v11 }
  0xa1   :  { %370 = vmatmul.mubr.f32.vlgmr.msra.gmra.mrb[0].mxu0 %v369_v59 }
  0xa2   :  { %1547 = vmatpush3.bf16.msra.mxu0 %v2836_v43  ;;  %1587 = vmatpush3.bf16.msk.msra.mxu1 %vm2056_vm5, %v2835_v30 }
  0xa3   :  { %737 = vmatprep.mubr.f32.mxu0 %v360_v24  ;;  %1549 = vmatprep.subr.bf16.mxu0 %v2837_v55 }
  0xa4   :  { %1589 = vmatprep.subr.msk.bf16.mxu1 %vm2117_vm10, %v2835_v30 }
  0xa6   :  { %1551 = vmatpush3.bf16.msra.mxu0 %v2838_v16  ;;  %1591 = vmatpush3.bf16.msk.msra.mxu1 %vm2839_vm13, %v2835_v30 }
  0xa7   :  { %1553 = vmatprep.subr.bf16.mxu0 %v2840_v27  ;;  %1593 = vmatprep.subr.msk.bf16.mxu1 %vm2841_vm15, %v2835_v30 }
  0xaa   :  { %1555 = vmatpush3.bf16.msra.mxu0 %v2842_v31  ;;  %1595 = vmatpush3.bf16.msk.msra.mxu1 %vm2843_vm9, %v2835_v30 }
  0xab   :  { %1557 = vmatprep.subr.bf16.mxu0 %v2844_v38  ;;  %1597 = vmatprep.subr.msk.bf16.mxu1 %vm2845_vm8, %v2835_v30 }
  0xae   :  { %1559 = vmatpush3.bf16.msra.mxu0 %v2846_v42  ;;  %1599 = vmatpush3.bf16.msk.msra.mxu1 %vm2264_vm1, %v2835_v30 }
  0xaf   :  { %1561 = vmatprep.subr.bf16.mxu0 %v2847_v53  ;;  %1601 = vmatprep.subr.msk.bf16.mxu1 %vm2282_vm12, %v2835_v30 }
  0xb2   :  { %1563 = vmatpush3.bf16.msra.mxu0 %v2848_v58  ;;  %1603 = vmatpush3.bf16.msk.msra.mxu1 %vm2850_vm11, %v2835_v30 }
  0xb3   :  { %1565 = vmatprep.subr.bf16.mxu0 %v2851_v14  ;;  %1605 = vmatprep.subr.msk.bf16.mxu1 %vm2347_vm3, %v2835_v30 }
  0xb6   :  { %1567 = vmatpush3.bf16.msra.mxu0 %v2853_v46  ;;  %1607 = vmatpush3.bf16.msk.msra.mxu1 %vm2372_vm4, %v2835_v30 }
  0xb7   :  { %1569 = vmatprep.subr.bf16.mxu0 %v2855_v10  ;;  %1641 = vmatprep.subr.msk.bf16.mxu1 %vm1931_vm6, %v2835_v30  ;;  %vm1125_vm6 = vcmask 58368  }
  0xb9   :  { %848 = vmatmul.mubr.f32.vlgmr.msra.gmra.mrb[2].mxu1 %v367_v56 }
  0xba   :  { %1571 = vmatpush3.bf16.msra.mxu0 %v2856_v28  ;;  %1643 = vmatpush3.bf16.msk.msra.mxu1 %vm1976_vm14, %v2835_v30 }
  0xbb   :  { %1118 = vmatprep.mubr.f32.mxu1 %v359_v36  ;;  %1573 = vmatprep.subr.bf16.mxu0 %v2858_v33 }
  0xbc   :  { %1645 = vmatprep.subr.msk.bf16.mxu1 %vm1993_vm0, %v2835_v30 }
  0xbe   :  { %1575 = vmatpush3.bf16.msra.mxu0 %v2859_v49  ;;  %1647 = vmatpush3.bf16.msk.msra.mxu1 %vm2009_vm7, %v2835_v30 }
  0xbf   :  { %1609 = vmatprep.subr.bf16.mxu0 %v2860_v52  ;;  %1649 = vmatprep.subr.msk.bf16.mxu1 %vm2025_vm2, %v2835_v30 }
  0xc1   :  { %740 = vmatmul.mubr.f32.vlgmr.msra.gmra.mrb[2].mxu0 %v366_v22 }
  0xc2   :  { %1611 = vmatpush3.bf16.msra.mxu0 %v2861_v2  ;;  %1014 = vmatprep.mubr.f32.mxu0 %v359_v36  ;;  %v2865_v36 = vld [vmem:[#allocation17_spill] sm:$0xff] }
  0xc3   :  { %1651 = vmatpush3.bf16.msk.msra.mxu1 %vm2056_vm5, %v2835_v30  ;;  %1613 = vmatprep.subr.bf16.mxu0 %v2862_v25 }
  0xc4   :  { %1653 = vmatprep.subr.msk.bf16.mxu1 %vm2117_vm10, %v2835_v30 }
  0xc6   :  { %1615 = vmatpush3.bf16.msra.mxu0 %v2863_v4 }
  0xc7   :  { %1655 = vmatpush3.bf16.msk.msra.mxu1 %vm2839_vm13, %v2835_v30  ;;  %1617 = vmatprep.subr.bf16.mxu0 %v2864_v8 }
  0xc8   :  { %1657 = vmatprep.subr.msk.bf16.mxu1 %vm2841_vm15, %v2835_v30 }
  0xca   :  { %1619 = vmatpush3.bf16.msra.mxu0 %v2865_v36 }
  0xcb   :  { %1659 = vmatpush3.bf16.msk.msra.mxu1 %vm2843_vm9, %v2835_v30  ;;  %1621 = vmatprep.subr.bf16.mxu0 %v2866_v15 }
  0xcc   :  { %1661 = vmatprep.subr.msk.bf16.mxu1 %vm2845_vm8, %v2835_v30 }
  0xce   :  { %1623 = vmatpush3.bf16.msra.mxu0 %v2867_v18 }
  0xcf   :  { %1663 = vmatpush3.bf16.msk.msra.mxu1 %vm2264_vm1, %v2835_v30  ;;  %1625 = vmatprep.subr.bf16.mxu0 %v2868_v19 }
  0xd0   :  { %1665 = vmatprep.subr.msk.bf16.mxu1 %vm2282_vm12, %v2835_v30 }
  0xd2   :  { %1627 = vmatpush3.bf16.msra.mxu0 %v2869_v45 }
  0xd3   :  { %1667 = vmatpush3.bf16.msk.msra.mxu1 %vm2850_vm11, %v2835_v30  ;;  %1629 = vmatprep.subr.bf16.mxu0 %v2870_v32 }
  0xd4   :  { %1669 = vmatprep.subr.msk.bf16.mxu1 %vm2347_vm3, %v2835_v30 }
  0xd6   :  { %1631 = vmatpush3.bf16.msra.mxu0 %v2871_v35 }
  0xd7   :  { %1671 = vmatpush3.bf16.msk.msra.mxu1 %vm2372_vm4, %v2835_v30  ;;  %1633 = vmatprep.subr.bf16.mxu0 %v2872_v40 }
  0xda   :  { %1120 = vmatmul.mubr.f32.vlgmr.msra.gmra.mrb[4].mxu1 %v2501_v20  ;;  %1635 = vmatpush3.bf16.msra.mxu0 %v2873_v3 }
  0xdb   :  { %1637 = vmatprep.subr.bf16.mxu0 %v2874_v6 }
  0xde   :  { %1639 = vmatpush3.bf16.msra.mxu0 %v2875_v13 }
  0xe1   :  { %1016 = vmatmul.mubr.f32.vlgmr.msra.gmra.mrb[4].mxu0 %v2501_v20 }
 0x16c   :  { %v1337_v60 = vpop.f32.mrb[0].mxu1 }
 0x16d   :  { %v1338_v61 = vpop.f32.mrb[1].mxu1 }
 0x16e   :  { %v1339_v9 = vadd.f32 %v1338_v61, %v1337_v60 }
 0x174   :  { %v1302_v21 = vpop.f32.mrb[0].mxu0 }
 0x175   :  { %v1303_v62 = vpop.f32.mrb[1].mxu0 }
 0x176   :  { %v1304_v57 = vadd.f32 %v1303_v62, %v1302_v21 }
 0x178   :  { %v604_v17 = vadd.f32 %v1339_v9, %v1304_v57 }
 0x18c   :  { %v1407_v50 = vpop.f32.mrb[2].mxu1 }
 0x18d   :  { %v1408_v39 = vpop.f32.mrb[3].mxu1 }
 0x18e   :  { %v1409_v56 = vadd.f32 %v1408_v39, %v1407_v50 }
 0x194   :  { %v1372_v23 = vpop.f32.mrb[2].mxu0 }
 0x195   :  { %v1373_v26 = vpop.f32.mrb[3].mxu0 }
 0x196   :  { %v1374_v24 = vadd.f32 %v1373_v26, %v1372_v23 }
 0x198   :  { %v742_v30 = vadd.f32 %v1374_v24, %v604_v17 }
 0x19a   :  { %v850_v29 = vadd.f32 %v1409_v56, %v742_v30 }
 0x1ad   :  { %v1477_v47 = vpop.f32.mrb[4].mxu1 }
 0x1ae   :  { %v1478_v37 = vpop.f32.mrb[5].mxu1 }
 0x1af   :  { %v1479_v0 = vadd.f32 %v1478_v37, %v1477_v47 }
 0x1b4   :  { %v1442_v54 = vpop.f32.mrb[4].mxu0 }
 0x1b5   :  { %v1443_v41 = vpop.f32.mrb[5].mxu0 }
 0x1b6   :  { %v1444_v5 = vadd.f32 %v1443_v41, %v1442_v54 }
 0x1b8   :  { %v1018_v51 = vadd.f32 %v1444_v5, %v850_v29 }
 0x1ba   :  { %v1122_v20 = vadd.f32 %v1479_v0, %v1018_v51 }
 0x1bc   :  { %1126 = vst.msk [vmem:[#allocation5] sm:$0x3] %vm1125_vm6, %v1122_v20 }
 0x1bd   :  { %1713 = shalt.err (!%p1710_p12)
}
 0x1be   :  { %s1714_s29 = scalar_lea.hbm %s2675_s2, 32 }
 0x1bf   :  { %p1715_p13 = scmp.ne.s32.totalorder %s2675_s2, %s1714_s29  ;;  %p1718_p0 = scmp.lt.u32.totalorder %s1714_s29, %s2675_s2 }
 0x1c1   :  { %p1720_p1 = pnand %p1718_p0, %p1715_p13 }
 0x1c3   :  { %1723 = shalt.err (!%p1720_p1)
}
 0x1c4   :  { %1136 = dma.vmem_to_hbm [thread:$0]  %s1134_s25, 32, %s2675_s2, [#allocation4]  }
 0x1c5   :  { %1726 = dma.done.wait [#allocation4], 32  }
 0x1c6   :  { %1727 = vsyncadd [#allocation4], 4294967264 }
 0x1c7   :  { %1140 = vsyncpa [#allocation3], 1 }
 0x1c8   :  { %1141 = vsyncpa [#allocation4], 1 }

</bundles_post_ra>
